<compile_context>
chip_gen: v5e
topology: v5e:2x2
jax: 0.10.0
libtpu: 0.0.40
codegen_flags: <defaults>
</compile_context>

<pallas_src>
import functools

import jax
import jax.numpy as jnp
from jax.experimental import pallas as pl
from jax.experimental.pallas import tpu as pltpu

HIDDEN = 256
LANE = 128


def _fc_output_kernel(x_ref, mask_ref, w2_ref, b2_ref, w3_ref, b3_ref, o_ref,
                      *, num_classes):
    """Fused: fc2 -> relu -> dropout(0.5) -> fc3 -> log_softmax(axis=-1).

    x_ref:    (TILE_B, 256)  bf16
    mask_ref: (TILE_B, 256)  bf16, values in {0.0, 2.0} (dropout keep * 1/(1-p))
    w2_ref:   (256, 256)     bf16
    b2_ref:   (1, 256)       f32
    w3_ref:   (256, C_pad)   bf16 (zero-padded columns)
    b3_ref:   (1, C_pad)     f32  (zero-padded columns)
    o_ref:    (TILE_B, C_pad) f32
    """
    # fc2 on the MXU, f32 accumulation.
    h = jnp.dot(x_ref[...], w2_ref[...],
                preferred_element_type=jnp.float32) + b2_ref[...]

    # ReLU + dropout (scale folded into the mask -> single multiply).
    h = jnp.maximum(h, 0.0) * mask_ref[...]

    # fc3 on the MXU (lane-dense, C padded to a multiple of 128), f32 accumulation.
    logits = jnp.dot(h.astype(w3_ref.dtype), w3_ref[...],
                     preferred_element_type=jnp.float32) + b3_ref[...]

    # Mask padded class lanes so they do not pollute max/logsumexp.
    lane = jax.lax.broadcasted_iota(jnp.int32, logits.shape, dimension=1)
    logits = jnp.where(lane < num_classes, logits, jnp.float32(-1e30))

    # log_softmax over the last dim (matches F.log_softmax on 2-D input, dim=1).
    m = jnp.max(logits, axis=-1, keepdims=True)
    s = logits - m
    lse = jnp.log(jnp.sum(jnp.exp(s), axis=-1, keepdims=True))
    o_ref[...] = s - lse


@functools.partial(jax.jit, static_argnames=("training", "tile_b"))
def fc_output_model(x, w2, b2, w3, b3, key, *, training=True, tile_b=1024):
    """x: (B, 256) f32; w2: (256,256); b2: (1,256); w3: (256,C); b3: (1,C); key: PRNG key."""
    B, D = x.shape
    assert D == HIDDEN
    C = w3.shape[1]
    C_pad = pl.cdiv(C, LANE) * LANE

    # Batch tile: big tiles for pipelining on large B, minimal padding on small B.
    if B >= tile_b:
        tb = tile_b
    else:
        tb = max(8, ((B + 7) // 8) * 8)
    B_pad = pl.cdiv(B, tb) * tb
    grid = (B_pad // tb,)

    # Pad activations/weights; cast MXU operands to bf16 (f32 accumulation in-kernel).
    x_p = jnp.pad(x, ((0, B_pad - B), (0, 0))).astype(jnp.bfloat16)
    w2_b = w2.astype(jnp.bfloat16)
    w3_p = jnp.pad(w3, ((0, 0), (0, C_pad - C))).astype(jnp.bfloat16)
    b3_p = jnp.pad(b3, ((0, 0), (0, C_pad - C))).astype(jnp.float32)
    b2_f = b2.astype(jnp.float32)

    # Dropout mask, p = 0.5, inverted scaling folded in ({0.0, 2.0}), bf16 to halve DMA bytes.
    if training:
        keep = jax.random.bernoulli(key, 0.5, (B_pad, HIDDEN))
        mask = keep.astype(jnp.bfloat16) * jnp.bfloat16(2.0)
    else:
        mask = jnp.ones((B_pad, HIDDEN), jnp.bfloat16)

    kernel = functools.partial(_fc_output_kernel, num_classes=C)

    bytes_accessed = (
        x_p.size * 2 + mask.size * 2 + w2_b.size * 2 + w3_p.size * 2
        + b2_f.size * 4 + b3_p.size * 4 + B_pad * C_pad * 4
    )
    cost = pl.CostEstimate(
        flops=2 * B_pad * HIDDEN * (HIDDEN + C_pad),
        transcendentals=B_pad * C_pad,
        bytes_accessed=bytes_accessed,
    )

    out_full = pl.pallas_call(
        kernel,
        out_shape=jax.ShapeDtypeStruct((B_pad, C_pad), jnp.float32),
        grid=grid,
        in_specs=[
            pl.BlockSpec((tb, HIDDEN), lambda i: (i, 0)),       # x tile
            pl.BlockSpec((tb, HIDDEN), lambda i: (i, 0)),       # dropout mask tile
            pl.BlockSpec((HIDDEN, HIDDEN), lambda i: (0, 0)),   # w2 (resident)
            pl.BlockSpec((1, HIDDEN), lambda i: (0, 0)),        # b2 (resident)
            pl.BlockSpec((HIDDEN, C_pad), lambda i: (0, 0)),    # w3 (resident)
            pl.BlockSpec((1, C_pad), lambda i: (0, 0)),         # b3 (resident)
        ],
        out_specs=pl.BlockSpec((tb, C_pad), lambda i: (i, 0)),
        compiler_params=pltpu.CompilerParams(
            dimension_semantics=("parallel",),
        ),
        cost_estimate=cost,
    )(x_p, mask, w2_b, b2_f, w3_p, b3_p)

    return out_full[:B, :C]


def init_params(key, class_count):
    """Deterministic PyTorch-style Linear init: U(-1/sqrt(fan_in), 1/sqrt(fan_in))."""
    k2w, k2b, k3w, k3b = jax.random.split(key, 4)
    bound = 1.0 / jnp.sqrt(256.0)
    w2 = jax.random.uniform(k2w, (256, 256), jnp.float32, -bound, bound)
    b2 = jax.random.uniform(k2b, (1, 256), jnp.float32, -bound, bound)
    w3 = jax.random.uniform(k3w, (256, class_count), jnp.float32, -bound, bound)
    b3 = jax.random.uniform(k3b, (1, class_count), jnp.float32, -bound, bound)
    return w2, b2, w3, b3


if __name__ == "__main__":
    key = jax.random.PRNGKey(0)
    k_params, k_x, k_drop = jax.random.split(key, 3)

    batch = 8
    class_count = 10

    w2, b2, w3, b3 = init_params(k_params, class_count)
    x = jax.random.normal(k_x, (batch, 256), jnp.float32)

    out = fc_output_model(x, w2, b2, w3, b3, k_drop)
    out = jax.block_until_ready(out)

    assert out.shape == (batch, class_count)
    assert out.dtype == jnp.float32
    # log_softmax rows should exp-sum to ~1
    row_sums = jnp.sum(jnp.exp(out), axis=-1)
    assert bool(jnp.all(jnp.abs(row_sums - 1.0) < 1e-3))

    print("KERNEL_OK")
</pallas_src>

<mosaic_0001>
module attributes {stable_mosaic.version = 11 : i64} {
  func.func @_fc_output_kernel(%arg0: i32, %arg1: memref<8x256xbf16, #tpu.memory_space<vmem>>, %arg2: memref<8x256xbf16, #tpu.memory_space<vmem>>, %arg3: memref<256x256xbf16, #tpu.memory_space<vmem>>, %arg4: memref<1x256xf32, #tpu.memory_space<vmem>>, %arg5: memref<256x128xbf16, #tpu.memory_space<vmem>>, %arg6: memref<1x128xf32, #tpu.memory_space<vmem>>, %arg7: memref<8x128xf32, #tpu.memory_space<vmem>>) attributes {dimension_semantics = [#tpu.dimension_semantics<parallel>], iteration_bounds = array<i64: 1>, scalar_prefetch = 0 : i64, scratch_operands = 0 : i64, tpu.core_type = #tpu.core_type<tc>, window_params = [{transform_indices = @transform_0, window_bounds = array<i64: 8, 256>}, {transform_indices = @transform_1, window_bounds = array<i64: 8, 256>}, {pipeline_mode = #tpu.pipeline_mode<synchronous>, transform_indices = @transform_2, window_bounds = array<i64: 256, 256>}, {pipeline_mode = #tpu.pipeline_mode<synchronous>, transform_indices = @transform_3, window_bounds = array<i64: 1, 256>}, {pipeline_mode = #tpu.pipeline_mode<synchronous>, transform_indices = @transform_4, window_bounds = array<i64: 256, 128>}, {pipeline_mode = #tpu.pipeline_mode<synchronous>, transform_indices = @transform_5, window_bounds = array<i64: 1, 128>}, {transform_indices = @transform_6, window_bounds = array<i64: 8, 128>}]} {
    %c0 = arith.constant 0 : index
    %c0_0 = arith.constant 0 : index
    %0 = vector.load %arg1[%c0, %c0_0] : memref<8x256xbf16, #tpu.memory_space<vmem>>, vector<8x256xbf16>
    %c0_1 = arith.constant 0 : index
    %c0_2 = arith.constant 0 : index
    %1 = vector.load %arg3[%c0_1, %c0_2] : memref<256x256xbf16, #tpu.memory_space<vmem>>, vector<256x256xbf16>
    %cst = arith.constant dense<0.000000e+00> : vector<8x256xf32>
    %2 = tpu.matmul %0, %1, %cst {dimension_numbers = #tpu.dot_dimension_numbers<[1], [0], [0], [1], [0, 0, 1, 1], [], []>} : vector<8x256xbf16>, vector<256x256xbf16>, vector<8x256xf32> -> vector<8x256xf32>
    %c0_3 = arith.constant 0 : index
    %c0_4 = arith.constant 0 : index
    %3 = vector.load %arg4[%c0_3, %c0_4] : memref<1x256xf32, #tpu.memory_space<vmem>>, vector<1x256xf32>
    %4 = vector.broadcast %3 : vector<1x256xf32> to vector<8x256xf32>
    %5 = arith.addf %2, %4 : vector<8x256xf32>
    %cst_5 = arith.constant 0.000000e+00 : f32
    %6 = vector.broadcast %cst_5 : f32 to vector<8x256xf32>
    %7 = arith.maximumf %5, %6 : vector<8x256xf32>
    %c0_6 = arith.constant 0 : index
    %c0_7 = arith.constant 0 : index
    %8 = vector.load %arg2[%c0_6, %c0_7] : memref<8x256xbf16, #tpu.memory_space<vmem>>, vector<8x256xbf16>
    %9 = arith.extf %8 : vector<8x256xbf16> to vector<8x256xf32>
    %10 = arith.mulf %7, %9 : vector<8x256xf32>
    %11 = arith.truncf %10 : vector<8x256xf32> to vector<8x256xbf16>
    %c0_8 = arith.constant 0 : index
    %c0_9 = arith.constant 0 : index
    %12 = vector.load %arg5[%c0_8, %c0_9] : memref<256x128xbf16, #tpu.memory_space<vmem>>, vector<256x128xbf16>
    %cst_10 = arith.constant dense<0.000000e+00> : vector<8x128xf32>
    %13 = tpu.matmul %11, %12, %cst_10 {dimension_numbers = #tpu.dot_dimension_numbers<[1], [0], [0], [1], [0, 0, 1, 1], [], []>} : vector<8x256xbf16>, vector<256x128xbf16>, vector<8x128xf32> -> vector<8x128xf32>
    %c0_11 = arith.constant 0 : index
    %c0_12 = arith.constant 0 : index
    %14 = vector.load %arg6[%c0_11, %c0_12] : memref<1x128xf32, #tpu.memory_space<vmem>>, vector<1x128xf32>
    %15 = vector.broadcast %14 : vector<1x128xf32> to vector<8x128xf32>
    %16 = arith.addf %13, %15 : vector<8x128xf32>
    %17 = tpu.iota {dimensions = array<i32: 1>} : vector<8x128xi32>
    %c10_i32 = arith.constant 10 : i32
    %18 = vector.broadcast %c10_i32 : i32 to vector<8x128xi32>
    %19 = arith.cmpi slt, %17, %18 : vector<8x128xi32>
    %cst_13 = arith.constant -1.000000e+30 : f32
    %20 = vector.broadcast %cst_13 : f32 to vector<8x128xf32>
    %21 = arith.select %19, %16, %20 : vector<8x128xi1>, vector<8x128xf32>
    %cst_14 = arith.constant dense<0xFF800000> : vector<8xf32>
    %22 = vector.multi_reduction <maximumf>, %21, %cst_14 [1] : vector<8x128xf32> to vector<8xf32>
    %23 = vector.shape_cast %22 : vector<8xf32> to vector<8x1xf32>
    %24 = vector.broadcast %23 : vector<8x1xf32> to vector<8x128xf32>
    %25 = arith.subf %21, %24 : vector<8x128xf32>
    %26 = math.exp %25 : vector<8x128xf32>
    %cst_15 = arith.constant dense<0.000000e+00> : vector<8xf32>
    %27 = vector.multi_reduction <add>, %26, %cst_15 [1] : vector<8x128xf32> to vector<8xf32>
    %28 = vector.shape_cast %27 : vector<8xf32> to vector<8x1xf32>
    %29 = math.log %28 : vector<8x1xf32>
    %30 = vector.broadcast %29 : vector<8x1xf32> to vector<8x128xf32>
    %31 = arith.subf %25, %30 : vector<8x128xf32>
    %c0_16 = arith.constant 0 : index
    %c0_17 = arith.constant 0 : index
    %32 = vector.load %arg7[%c0_16, %c0_17] : memref<8x128xf32, #tpu.memory_space<vmem>>, vector<8x128xf32>
    tpu.vector_store %arg7[%c0_16, %c0_17], %31 {strides = array<i32>} : memref<8x128xf32, #tpu.memory_space<vmem>>, vector<8x128xf32>,
    return
  }
  func.func @transform_0(%arg0: i32) -> (i32, i32) {
    %c0_i32 = arith.constant 0 : i32
    %c0_i32_0 = arith.constant 0 : i32
    return %arg0, %c0_i32 : i32, i32
  }
  func.func @transform_1(%arg0: i32) -> (i32, i32) {
    %c0_i32 = arith.constant 0 : i32
    %c0_i32_0 = arith.constant 0 : i32
    return %arg0, %c0_i32 : i32, i32
  }
  func.func @transform_2(%arg0: i32) -> (i32, i32) {
    %c0_i32 = arith.constant 0 : i32
    %c0_i32_0 = arith.constant 0 : i32
    %c0_i32_1 = arith.constant 0 : i32
    return %c0_i32, %c0_i32_0 : i32, i32
  }
  func.func @transform_3(%arg0: i32) -> (i32, i32) {
    %c0_i32 = arith.constant 0 : i32
    %c0_i32_0 = arith.constant 0 : i32
    %c0_i32_1 = arith.constant 0 : i32
    return %c0_i32, %c0_i32_0 : i32, i32
  }
  func.func @transform_4(%arg0: i32) -> (i32, i32) {
    %c0_i32 = arith.constant 0 : i32
    %c0_i32_0 = arith.constant 0 : i32
    %c0_i32_1 = arith.constant 0 : i32
    return %c0_i32, %c0_i32_0 : i32, i32
  }
  func.func @transform_5(%arg0: i32) -> (i32, i32) {
    %c0_i32 = arith.constant 0 : i32
    %c0_i32_0 = arith.constant 0 : i32
    %c0_i32_1 = arith.constant 0 : i32
    return %c0_i32, %c0_i32_0 : i32, i32
  }
  func.func @transform_6(%arg0: i32) -> (i32, i32) {
    %c0_i32 = arith.constant 0 : i32
    %c0_i32_0 = arith.constant 0 : i32
    return %arg0, %c0_i32 : i32, i32
  }
}

</mosaic_0001>

<bundles_post_ra>
// kernel: fc_output_model.1
= control target key start
LH: loop header
LB: loop body
LE: loop exit
PB: predicated region body
PF: predicated region fallthrough
CT: control target
= control target key end

     0   :  { %s1043_s0 = inlined_call_operand.vmem [shape: bf16[8,256], index: 0, kind: input, shape index: {}]   ;;  %s1044_s1 = inlined_call_operand.vmem [shape: bf16[8,256], index: 1, kind: input, shape index: {}]   ;;  %s1045_s2 = inlined_call_operand.vmem [shape: bf16[256,256], index: 2, kind: input, shape index: {}]   ;;  %s1046_s3 = inlined_call_operand.vmem [shape: f32[1,256], index: 3, kind: input, shape index: {}]   ;;  %s1047_s4 = inlined_call_operand.vmem [shape: bf16[256,128], index: 4, kind: input, shape index: {}]   ;;  %s1048_s5 = inlined_call_operand.vmem [shape: f32[1,128], index: 5, kind: input, shape index: {}]   ;;  %s1049_s6 = inlined_call_operand.hbm [shape: f32[8,128], index: 6, kind: output, shape index: {}]  }
   0x1   :  { %v538_v0 = vld [vmem:[%s1045_s2 + $0x70] sm:$0xf]  ;;  %v687_v1 = vld [vmem:[%s1045_s2 + $0x74] sm:$0xf0]  ;;  %v686_v5 = vld [vmem:[%s1045_s2 + $0x74] sm:$0xf] }
   0x2   :  { %v602_v2 = vld [vmem:[%s1045_s2 + $0xf0] sm:$0xf]  ;;  %v539_v3 = vor.u32 %v687_v1, %v538_v0  ;;  %v703_v4 = vld [vmem:[%s1045_s2 + $0xf4] sm:$0xf0]  ;;  %v540_v6 = vld [vmem:[%s1045_s2 + $0x78] sm:$0xf0] }
   0x3   :  { %v603_v7 = vor.u32 %v703_v4, %v602_v2  ;;  %v543_v8 = vor.u32 %v686_v5, %v540_v6  ;;  %v702_v9 = vld [vmem:[%s1045_s2 + $0xf4] sm:$0xf]  ;;  %v604_v10 = vld [vmem:[%s1045_s2 + $0xf8] sm:$0xf0]  ;;  %v530_v11 = vld [vmem:[%s1045_s2 + $0x60] sm:$0xf] }
   0x4   :  { %230 = vmatpush.bf16.msra.mxu0 %v539_v3  ;;  %v607_v12 = vor.u32 %v702_v9, %v604_v10  ;;  %v685_v13 = vld [vmem:[%s1045_s2 + $0x64] sm:$0xf0]  ;;  %v594_v14 = vld [vmem:[%s1045_s2 + $0xe0] sm:$0xf]  ;;  %v684_v18 = vld [vmem:[%s1045_s2 + $0x64] sm:$0xf] }
   0x5   :  { %v701_v15 = vld [vmem:[%s1045_s2 + $0xe4] sm:$0xf0]  ;;  %243 = vmatpush.bf16.msra.mxu1 %v603_v7  ;;  %256 = vmatpush.bf16.msra.mxu2 %v543_v8  ;;  %v531_v16 = vor.u32 %v685_v13, %v530_v11  ;;  %v532_v19 = vld [vmem:[%s1045_s2 + $0x68] sm:$0xf0]  ;;  %v700_v20 = vld [vmem:[%s1045_s2 + $0xe4] sm:$0xf] }
   0x6   :  { %v595_v17 = vor.u32 %v701_v15, %v594_v14  ;;  %269 = vmatpush.bf16.msra.mxu3 %v607_v12  ;;  %v535_v21 = vor.u32 %v684_v18, %v532_v19  ;;  %v596_v22 = vld [vmem:[%s1045_s2 + $0xe8] sm:$0xf0]  ;;  %v522_v23 = vld [vmem:[%s1045_s2 + $0x50] sm:$0xf]  ;;  %v683_v24 = vld [vmem:[%s1045_s2 + $0x54] sm:$0xf0] }
   0x7   :  { %v599_v25 = vor.u32 %v700_v20, %v596_v22  ;;  %v586_v26 = vld [vmem:[%s1045_s2 + $0xd0] sm:$0xf]  ;;  %v699_v27 = vld [vmem:[%s1045_s2 + $0xd4] sm:$0xf0]  ;;  %v682_v28 = vld [vmem:[%s1045_s2 + $0x54] sm:$0xf]  ;;  %v523_v29 = vor.u32 %v683_v24, %v522_v23 }
   0x8   :  { %231 = vmatpush.bf16.msra.mxu0 %v531_v16  ;;  %v524_v30 = vld [vmem:[%s1045_s2 + $0x58] sm:$0xf0]  ;;  %v698_v31 = vld [vmem:[%s1045_s2 + $0xd4] sm:$0xf]  ;;  %v587_v33 = vor.u32 %v699_v27, %v586_v26  ;;  %v514_v35 = vld [vmem:[%s1045_s2 + $0x40] sm:$0xf] }
   0x9   :  { %v588_v32 = vld [vmem:[%s1045_s2 + $0xd8] sm:$0xf0]  ;;  %244 = vmatpush.bf16.msra.mxu1 %v595_v17  ;;  %257 = vmatpush.bf16.msra.mxu2 %v535_v21  ;;  %v527_v34 = vor.u32 %v682_v28, %v524_v30  ;;  %v681_v36 = vld [vmem:[%s1045_s2 + $0x44] sm:$0xf0]  ;;  %v578_v37 = vld [vmem:[%s1045_s2 + $0xc0] sm:$0xf] }
   0xa   :  { %270 = vmatpush.bf16.msra.mxu3 %v599_v25  ;;  %v591_v38 = vor.u32 %v698_v31, %v588_v32  ;;  %v697_v39 = vld [vmem:[%s1045_s2 + $0xc4] sm:$0xf0]  ;;  %v680_v40 = vld [vmem:[%s1045_s2 + $0x44] sm:$0xf]  ;;  %v516_v41 = vld [vmem:[%s1045_s2 + $0x48] sm:$0xf0]  ;;  %v515_v44 = vor.u32 %v681_v36, %v514_v35 }
   0xb   :  { %v696_v42 = vld [vmem:[%s1045_s2 + $0xc4] sm:$0xf]  ;;  %v580_v43 = vld [vmem:[%s1045_s2 + $0xc8] sm:$0xf0]  ;;  %v579_v45 = vor.u32 %v697_v39, %v578_v37  ;;  %v519_v46 = vor.u32 %v680_v40, %v516_v41  ;;  %v506_v47 = vld [vmem:[%s1045_s2 + $0x30] sm:$0xf] }
   0xc   :  { %232 = vmatpush.bf16.msra.mxu0 %v523_v29  ;;  %v679_v48 = vld [vmem:[%s1045_s2 + $0x34] sm:$0xf0]  ;;  %v570_v49 = vld [vmem:[%s1045_s2 + $0xb0] sm:$0xf]  ;;  %v583_v50 = vor.u32 %v696_v42, %v580_v43  ;;  %v678_v52 = vld [vmem:[%s1045_s2 + $0x34] sm:$0xf] }
   0xd   :  { %245 = vmatpush.bf16.msra.mxu1 %v587_v33  ;;  %258 = vmatpush.bf16.msra.mxu2 %v527_v34  ;;  %v695_v51 = vld [vmem:[%s1045_s2 + $0xb4] sm:$0xf0]  ;;  %v508_v53 = vld [vmem:[%s1045_s2 + $0x38] sm:$0xf0]  ;;  %v694_v54 = vld [vmem:[%s1045_s2 + $0xb4] sm:$0xf]  ;;  %v507_v56 = vor.u32 %v679_v48, %v506_v47 }
   0xe   :  { %271 = vmatpush.bf16.msra.mxu3 %v591_v38  ;;  %v572_v55 = vld [vmem:[%s1045_s2 + $0xb8] sm:$0xf0]  ;;  %v571_v57 = vor.u32 %v695_v51, %v570_v49  ;;  %v511_v58 = vor.u32 %v678_v52, %v508_v53  ;;  %v498_v59 = vld [vmem:[%s1045_s2 + $0x20] sm:$0xf]  ;;  %v677_v60 = vld [vmem:[%s1045_s2 + $0x24] sm:$0xf0] }
   0xf   :  { %v562_v61 = vld [vmem:[%s1045_s2 + $0xa0] sm:$0xf]  ;;  %v575_v62 = vor.u32 %v694_v54, %v572_v55  ;;  %v693_v63 = vld [vmem:[%s1045_s2 + $0xa4] sm:$0xf0]  ;;  %v676_v0 = vld [vmem:[%s1045_s2 + $0x24] sm:$0xf]  ;;  %v499_v4 = vor.u32 %v677_v60, %v498_v59 }
  0x10   :  { %233 = vmatpush.bf16.msra.mxu0 %v515_v44  ;;  %v500_v1 = vld [vmem:[%s1045_s2 + $0x28] sm:$0xf0]  ;;  %v692_v2 = vld [vmem:[%s1045_s2 + $0xa4] sm:$0xf]  ;;  %v563_v5 = vor.u32 %v693_v63, %v562_v61  ;;  %v490_v7 = vld [vmem:[%s1045_s2 + $0x10] sm:$0xf] }
  0x11   :  { %246 = vmatpush.bf16.msra.mxu1 %v579_v45  ;;  %259 = vmatpush.bf16.msra.mxu2 %v519_v46  ;;  %v564_v3 = vld [vmem:[%s1045_s2 + $0xa8] sm:$0xf0]  ;;  %v503_v6 = vor.u32 %v676_v0, %v500_v1  ;;  %v675_v8 = vld [vmem:[%s1045_s2 + $0x14] sm:$0xf0]  ;;  %v554_v9 = vld [vmem:[%s1045_s2 + $0x90] sm:$0xf] }
  0x12   :  { %272 = vmatpush.bf16.msra.mxu3 %v583_v50  ;;  %v567_v10 = vor.u32 %v692_v2, %v564_v3  ;;  %v691_v11 = vld [vmem:[%s1045_s2 + $0x94] sm:$0xf0]  ;;  %v674_v12 = vld [vmem:[%s1045_s2 + $0x14] sm:$0xf]  ;;  %v492_v13 = vld [vmem:[%s1045_s2 + $0x18] sm:$0xf0]  ;;  %v491_v16 = vor.u32 %v675_v8, %v490_v7 }
  0x13   :  { %v690_v14 = vld [vmem:[%s1045_s2 + $0x94] sm:$0xf]  ;;  %v556_v15 = vld [vmem:[%s1045_s2 + $0x98] sm:$0xf0]  ;;  %v482_v17 = vld [vmem:[%s1045_s2] sm:$0xf]  ;;  %v555_v20 = vor.u32 %v691_v11, %v554_v9  ;;  %v495_v21 = vor.u32 %v674_v12, %v492_v13 }
  0x14   :  { %234 = vmatpush.bf16.msra.mxu0 %v507_v56  ;;  %v673_v18 = vld [vmem:[%s1045_s2 + $0x4] sm:$0xf0]  ;;  %v24_v19 = vld [vmem:[%s1043_s0] sm:$0xff]  ;;  %v559_v25 = vor.u32 %v690_v14, %v556_v15  ;;  %v484_v26 = vld [vmem:[%s1045_s2 + $0x8] sm:$0xf0] }
  0x15   :  { %247 = vmatpush.bf16.msra.mxu1 %v571_v57  ;;  %260 = vmatpush.bf16.msra.mxu2 %v511_v58  ;;  %v546_v22 = vld [vmem:[%s1045_s2 + $0x80] sm:$0xf]  ;;  %v689_v23 = vld [vmem:[%s1045_s2 + $0x84] sm:$0xf0]  ;;  %v672_v24 = vld [vmem:[%s1045_s2 + $0x4] sm:$0xf] }
  0x16   :  { %273 = vmatpush.bf16.msra.mxu3 %v575_v62 }
  0x18   :  { %235 = vmatpush.bf16.msra.mxu0 %v499_v4 }
  0x19   :  { %248 = vmatpush.bf16.msra.mxu1 %v563_v5  ;;  %261 = vmatpush.bf16.msra.mxu2 %v503_v6 }
  0x1a   :  { %274 = vmatpush.bf16.msra.mxu3 %v567_v10 }
  0x1b   :  { %11 = vsyncpa [#allocation3], 0  ;;  %v688_v27 = vld [vmem:[%s1045_s2 + $0x84] sm:$0xf]  ;;  %v548_v28 = vld [vmem:[%s1045_s2 + $0x88] sm:$0xf0]  ;;  %v64_v29 = vunpack.c.l.b16 %v24_v19  ;;  %v483_v30 = vor.u32 %v673_v18, %v482_v17  ;;  %v65_v31 = vunpack.c.h.b16 %v24_v19  ;;  %v547_v32 = vor.u32 %v689_v23, %v546_v22 }
  0x1c   :  { %236 = vmatpush.bf16.msra.mxu0 %v491_v16  ;;  %v487_v33 = vor.u32 %v672_v24, %v484_v26  ;;  %v551_v34 = vor.u32 %v688_v27, %v548_v28  ;;  %v711_v35 = vld [vmem:[%s1047_s4 + $0x38] sm:$0xff]  ;;  %v710_v39 = vld [vmem:[%s1047_s4 + $0x30] sm:$0xff]  ;;  %v709_v41 = vld [vmem:[%s1047_s4 + $0x28] sm:$0xff]  ;;  %v449_v13 = vlaneseq  ;;  %s471_s17 = sshll.u32 %s1049_s6, 4  ;;  %s472_s17 = int_to_ptr.hbm [resolvable:$true] %s471_s17 }
  0x1d   :  { %249 = vmatpush.bf16.msra.mxu1 %v555_v20  ;;  %262 = vmatpush.bf16.msra.mxu2 %v495_v21  ;;  %v66_v36 = vpack.c.b16 %v64_v29, %v64_v29  ;;  %v719_v37 = vld [vmem:[%s1047_s4 + $0x78] sm:$0xff]  ;;  %v67_v38 = vpack.c.b16 %v65_v31, %v65_v31  ;;  %v718_v40 = vld [vmem:[%s1047_s4 + $0x70] sm:$0xff]  ;;  %v717_v42 = vld [vmem:[%s1047_s4 + $0x68] sm:$0xff] }
  0x1e   :  { %275 = vmatpush.bf16.msra.mxu3 %v559_v25  ;;  %v708_v43 = vld [vmem:[%s1047_s4 + $0x20] sm:$0xff]  ;;  %v707_v45 = vld [vmem:[%s1047_s4 + $0x18] sm:$0xff]  ;;  %v706_v46 = vld [vmem:[%s1047_s4 + $0x10] sm:$0xff]  ;;  %v450_v16 = vand.u32 127, %v449_v13 }
  0x1f   :  { %v716_v44 = vld [vmem:[%s1047_s4 + $0x60] sm:$0xff]  ;;  %v715_v47 = vld [vmem:[%s1047_s4 + $0x58] sm:$0xff]  ;;  %v705_v48 = vld [vmem:[%s1047_s4 + $0x8] sm:$0xff] }
  0x20   :  { %237 = vmatpush.bf16.msra.mxu0 %v483_v30  ;;  %v714_v49 = vld [vmem:[%s1047_s4 + $0x50] sm:$0xff]  ;;  %v704_v50 = vld [vmem:[%s1047_s4] sm:$0xff]  ;;  %v713_v51 = vld [vmem:[%s1047_s4 + $0x48] sm:$0xff]  ;;  %vm451_vm0 = vcmp.lt.s32.totalorder %v450_v16, 10 }
  0x21   :  { %250 = vmatpush.bf16.msra.mxu1 %v547_v32  ;;  %263 = vmatpush.bf16.msra.mxu2 %v487_v33  ;;  %v712_v52 = vld [vmem:[%s1047_s4 + $0x40] sm:$0xff]  ;;  %s752_s4 = smov [#allocation2]  }
  0x22   :  { %276 = vmatpush.bf16.msra.mxu3 %v551_v34  ;;  %v57_v53 = vld [vmem:[%s1046_s3] sm:$0x3] }
  0x23   :  { %238 = vmatmul.bf16.vlgmr.msra.gmra.mxu0 %v66_v36  ;;  %v59_v54 = vperm.slane %v57_v53, 0  ;;  %v284_v56 = vld [vmem:[%s1044_s1] sm:$0xff]  ;;  %v60_v61 = vperm.slane %v57_v53, 1 }
  0x24   :  { %423 = vmatpush.bf16.msrb.mxu0 %v711_v35  ;;  %251 = vmatmul.bf16.vlgmr.msra.gmra.mxu1 %v67_v38  ;;  %v285_v60 = vunpack.c.l.bf16 %v284_v56  ;;  %v286_v7 = vunpack.c.h.bf16 %v284_v56  ;;  %v721_v14 = vld [vmem:[%s1048_s5] ss:$0 sm:$0xff]  ;;  %s469_s5 = sshll.u32 %s752_s4, 4  ;;  %s470_s5 = int_to_ptr.vmem [resolvable:$true] %s469_s5 }
  0x25   :  { %436 = vmatpush.bf16.msrb.mxu1 %v719_v37  ;;  %264 = vmatmul.bf16.vlgmr.msra.gmra.mxu2 %v66_v36 }
  0x26   :  { %277 = vmatmul.bf16.vlgmr.msra.gmra.mxu3 %v67_v38 }
  0x28   :  { %424 = vmatpush.bf16.msrb.mxu0 %v710_v39 }
  0x29   :  { %437 = vmatpush.bf16.msrb.mxu1 %v718_v40 }
  0x2c   :  { %425 = vmatpush.bf16.msrb.mxu0 %v709_v41 }
  0x2d   :  { %438 = vmatpush.bf16.msrb.mxu1 %v717_v42 }
  0x30   :  { %426 = vmatpush.bf16.msrb.mxu0 %v708_v43 }
  0x31   :  { %439 = vmatpush.bf16.msrb.mxu1 %v716_v44 }
  0x34   :  { %427 = vmatpush.bf16.msrb.mxu0 %v707_v45 }
  0x35   :  { %440 = vmatpush.bf16.msrb.mxu1 %v715_v47 }
  0x38   :  { %428 = vmatpush.bf16.msrb.mxu0 %v706_v46 }
  0x39   :  { %441 = vmatpush.bf16.msrb.mxu1 %v714_v49 }
  0x3c   :  { %429 = vmatpush.bf16.msrb.mxu0 %v705_v48 }
  0x3d   :  { %442 = vmatpush.bf16.msrb.mxu1 %v713_v51 }
  0x40   :  { %430 = vmatpush.bf16.msrb.mxu0 %v704_v50 }
  0x41   :  { %443 = vmatpush.bf16.msrb.mxu1 %v712_v52 }
  0xa0   :  { %v239_v55 = vpop.f32.mrf.mxu0 }
  0xa1   :  { %v240_v57 = vadd.f32 %v239_v55, %v59_v54  ;;  %v252_v58 = vpop.f32.mrf.mxu1 }
  0xa3   :  { %v253_v59 = vadd.f32 %v252_v58, %v240_v57 }
  0xa5   :  { %v282_v62 = vmax.f32 %v253_v59, 0.0 }
  0xa7   :  { %v287_v63 = vmul.f32 %v285_v60, %v282_v62 }
  0xa8   :  { %v265_v0 = vpop.f32.mrf.mxu2  ;;  %v241_v3 = vpop.f32.mrf.mxu0 }
  0xa9   :  { %v266_v1 = vadd.f32 %v265_v0, %v60_v61  ;;  %v278_v2 = vpop.f32.mrf.mxu3  ;;  %v289_v4 = vpack.c.bf16 %v287_v63, %v287_v63  ;;  %v254_v5 = vpop.f32.mrf.mxu1 }
  0xab   :  { %v279_v6 = vadd.f32 %v278_v2, %v266_v1  ;;  %431 = vmatmul.bf16.vlgmr.msrb.gmra.mxu0 %v289_v4 }
  0xad   :  { %v283_v8 = vmax.f32 %v279_v6, 0.0 }
  0xaf   :  { %v288_v9 = vmul.f32 %v286_v7, %v283_v8 }
  0xb0   :  { %v267_v10 = vpop.f32.mrf.mxu2 }
  0xb1   :  { %v290_v11 = vpack.c.bf16 %v288_v9, %v288_v9  ;;  %v280_v12 = vpop.f32.mrf.mxu3 }
  0xb3   :  { %444 = vmatmul.bf16.vlgmr.msrb.gmra.mxu1 %v290_v11 }
 0x128   :  { %v432_v15 = vpop.f32.mrf.mxu0 }
 0x129   :  { %v433_v17 = vadd.f32 %v721_v14, %v432_v15 }
 0x130   :  { %v445_v18 = vpop.f32.mrf.mxu1  ;;  %v434_v20 = vpop.f32.mrf.mxu0 }
 0x131   :  { %v446_v19 = vadd.f32 %v445_v18, %v433_v17 }
 0x133   :  { %v452_v21 = vsel %vm451_vm0, %v446_v19, -1e+30 }
 0x134   :  { %453 = vmax.xlane.f32.xlu0 %v452_v21 }
 0x138   :  { %v447_v22 = vpop.f32.mrf.mxu1 }
 0x1a7   :  { %v454_v23 = vpop.xlane.xlu0 %453 }
 0x1a8   :  { %v455_v24 = vsub.f32 %v452_v21, %v454_v23 }
 0x1aa   :  { %v456_v25 = vmul.f32 1.442695, %v455_v24 }
 0x1ac   :  { %722 = vpow2.f32 %v456_v25 }
 0x1b2   :  { %v723_v26 = vpop.eup %722 }
 0x1b3   :  { %458 = vadd.xlane.f32.xlu0 %v723_v26 }
 0x226   :  { %v459_v27 = vpop.xlane.xlu0 %458 }
 0x227   :  { %724 = vlog2.f32 %v459_v27 }
 0x22d   :  { %v725_v28 = vpop.eup %724 }
 0x22e   :  { %v461_v29 = vmul.f32 0.6931472, %v725_v28 }
 0x230   :  { %v462_v30 = vsub.f32 %v455_v24, %v461_v29 }
 0x232   :  { %463 = vst [vmem:[#allocation2] sm:$0xff] %v462_v30 }
 0x233   :  { %474 = dma.vmem_to_hbm [thread:$0]  %s470_s5, 128, %s472_s17, [#allocation3]  }
 0x234   :  { %750 = dma.done.wait [#allocation3], 128  }
 0x235   :  { %751 = vsyncadd [#allocation3], 4294967168 }
 0x236   :  { %479 = vsyncpa [#allocation3], 1 }

</bundles_post_ra>
